<compile_context>
chip_gen: v6e
topology: v6e:2x2x1
jax: 0.10.0
libtpu: 0.0.40
codegen_flags: <defaults>
</compile_context>

<pallas_src>
import functools

import jax
import jax.numpy as jnp
from jax.experimental import pallas as pl
from jax.experimental.pallas import tpu as pltpu


def _outlier_replacer_kernel(v_ref, o_ref, *, mu, bound, fill):
    v = v_ref[...].astype(jnp.float32)
    # |(v - mu) / sigma| > threshold  <=>  |v - mu| > threshold * |sigma|
    outlier = (jnp.abs(v - mu) > bound) | jnp.isnan(v)
    f32 = jnp.finfo(jnp.float32)
    clamped = jnp.clip(v, f32.min, f32.max)          # nan_to_num's +/-inf behavior
    o_ref[...] = jnp.where(outlier, jnp.float32(fill), clamped)


def outlier_replacer(v, *, mean, std, outlier_threshold,
                     computed_outlier_fill_value,
                     lanes=1024, block_rows=512):
    """Pallas TPU equivalent of `_OutlierReplacer.forward`.

    Accepts any float dtype (bf16 input is upcast in-kernel), any shape, and
    returns float32 with the same shape as `v`.
    """
    mu = float(mean)
    sigma = float(std)
    if sigma == 0.0:
        # Mirrors ZScoreTransformer.__init__'s rejection of std == 0.
        raise RuntimeError("Cannot apply zscore normalization: std is 0.")
    threshold = float(outlier_threshold)
    fill = float(computed_outlier_fill_value)
    bound = threshold * abs(sigma)

    orig_shape = v.shape
    n = v.size                                   # static Python int
    flat = v.reshape(-1)

    # Lane-dense slab: rows a multiple of 8 (sublane tile), columns a large
    # multiple of 128 (lane tile). The op is elementwise, so this is pure
    # layout plumbing; padding is only materialized for ragged sizes.
    row_unit = lanes * 8
    padded = pl.cdiv(n, row_unit) * row_unit
    if padded != n:
        flat = jnp.pad(flat, (0, padded - n))
    n_rows = padded // lanes
    slab = flat.reshape(n_rows, lanes)

    eff_block_rows = min(block_rows, n_rows)     # both multiples of 8
    grid = (pl.cdiv(n_rows, eff_block_rows),)    # ragged last block handled by Pallas

    kernel = functools.partial(_outlier_replacer_kernel,
                               mu=mu, bound=bound, fill=fill)

    out_slab = pl.pallas_call(
        kernel,
        out_shape=jax.ShapeDtypeStruct((n_rows, lanes), jnp.float32),
        grid=grid,
        in_specs=[pl.BlockSpec((eff_block_rows, lanes), lambda i: (i, 0))],
        out_specs=pl.BlockSpec((eff_block_rows, lanes), lambda i: (i, 0)),
        compiler_params=pltpu.CompilerParams(
            dimension_semantics=("parallel",),
        ),
    )(slab)

    return out_slab.reshape(-1)[:n].reshape(orig_shape)


if __name__ == "__main__":
    # Deterministic "metadata" (what _OutlierReplacer.__init__ would pull from
    # the training-set metadata dict).
    mean = 1.5
    std = 2.0
    outlier_threshold = 3.0
    computed_outlier_fill_value = 0.25

    # Small, ragged (batch, features) block: exercises the pad/reshape path and
    # the NaN / inf handling of nan_to_num.
    key = jax.random.PRNGKey(0)
    v = jax.random.normal(key, (16, 37), dtype=jnp.float32) * 10.0 + 1.5
    v = v.at[0, 0].set(jnp.nan)
    v = v.at[1, 1].set(jnp.inf)
    v = v.at[2, 2].set(-jnp.inf)

    out = outlier_replacer(
        v,
        mean=mean,
        std=std,
        outlier_threshold=outlier_threshold,
        computed_outlier_fill_value=computed_outlier_fill_value,
    )
    jax.block_until_ready(out)

    # Pure-JAX reference with the exact torch forward semantics (divide form).
    z = (v - mean) / std
    masked = jnp.where(jnp.abs(z) > outlier_threshold, jnp.float32(jnp.nan), v)
    ref = jnp.nan_to_num(masked, nan=computed_outlier_fill_value).astype(jnp.float32)

    assert out.dtype == jnp.float32
    assert out.shape == v.shape
    assert jnp.allclose(out, ref), "mismatch vs reference"

    print("KERNEL_OK")
</pallas_src>

<mosaic_0001>
module attributes {stable_mosaic.version = 11 : i64} {
  func.func @_outlier_replacer_kernel(%arg0: i32, %arg1: memref<8x1024xf32, #tpu.memory_space<vmem>>, %arg2: memref<8x1024xf32, #tpu.memory_space<vmem>>) attributes {dimension_semantics = [#tpu.dimension_semantics<parallel>], iteration_bounds = array<i64: 1>, scalar_prefetch = 0 : i64, scratch_operands = 0 : i64, tpu.core_type = #tpu.core_type<tc>, window_params = [{transform_indices = @transform_0, window_bounds = array<i64: 8, 1024>}, {transform_indices = @transform_1, window_bounds = array<i64: 8, 1024>}]} {
    %c0 = arith.constant 0 : index
    %c0_0 = arith.constant 0 : index
    %0 = vector.load %arg1[%c0, %c0_0] : memref<8x1024xf32, #tpu.memory_space<vmem>>, vector<8x1024xf32>
    %cst = arith.constant 1.500000e+00 : f32
    %1 = vector.broadcast %cst : f32 to vector<8x1024xf32>
    %2 = arith.subf %0, %1 : vector<8x1024xf32>
    %3 = math.absf %2 : vector<8x1024xf32>
    %cst_1 = arith.constant 6.000000e+00 : f32
    %4 = vector.broadcast %cst_1 : f32 to vector<8x1024xf32>
    %5 = arith.cmpf ogt, %3, %4 : vector<8x1024xf32>
    %6 = arith.cmpf one, %0, %0 : vector<8x1024xf32>
    %7 = arith.ori %5, %6 : vector<8x1024xi1>
    %cst_2 = arith.constant -3.40282347E+38 : f32
    %cst_3 = arith.constant 3.40282347E+38 : f32
    %8 = vector.broadcast %cst_2 : f32 to vector<8x1024xf32>
    %9 = arith.maximumf %8, %0 : vector<8x1024xf32>
    %10 = vector.broadcast %cst_3 : f32 to vector<8x1024xf32>
    %11 = arith.minimumf %10, %9 : vector<8x1024xf32>
    %cst_4 = arith.constant 2.500000e-01 : f32
    %12 = vector.broadcast %cst_4 : f32 to vector<8x1024xf32>
    %13 = arith.select %7, %12, %11 : vector<8x1024xi1>, vector<8x1024xf32>
    %c0_5 = arith.constant 0 : index
    %c0_6 = arith.constant 0 : index
    %14 = vector.load %arg2[%c0_5, %c0_6] : memref<8x1024xf32, #tpu.memory_space<vmem>>, vector<8x1024xf32>
    tpu.vector_store %arg2[%c0_5, %c0_6], %13 {strides = array<i32>} : memref<8x1024xf32, #tpu.memory_space<vmem>>, vector<8x1024xf32>,
    return
  }
  func.func @transform_0(%arg0: i32) -> (i32, i32) {
    %c0_i32 = arith.constant 0 : i32
    %c0_i32_0 = arith.constant 0 : i32
    return %arg0, %c0_i32 : i32, i32
  }
  func.func @transform_1(%arg0: i32) -> (i32, i32) {
    %c0_i32 = arith.constant 0 : i32
    %c0_i32_0 = arith.constant 0 : i32
    return %arg0, %c0_i32 : i32, i32
  }
}

</mosaic_0001>

<bundles_post_ra>
// kernel: tpu_custom_call.1
= control target key start
LH: loop header
LB: loop body
LE: loop exit
PB: predicated region body
PF: predicated region fallthrough
CT: control target
= control target key end

     0   :  { %6 = vsyncpa [#allocation3], 0  ;;  %s202_s0 = inlined_call_operand.hbm [shape: f32[8,1024], index: 0, kind: input, shape index: {}]   ;;  %s203_s1 = inlined_call_operand.hbm [shape: f32[8,1024], index: 1, kind: output, shape index: {}]  }
   0x1   :  { %7 = vsyncpa [#allocation4], 0  ;;  %s178_s6 = smov [#allocation2]  }
   0x2   :  { %s14_s7 = sshll.u32 %s178_s6, 4  ;;  %s15_s7 = int_to_ptr.vmem [resolvable:$true] %s14_s7 }
   0x3   :  { %s142_s8 = scalar_lea.vmem %s15_s7, 1024  ;;  %p147_p1 = scmp.lt.s32.totalorder %s15_s7, %s15_s7 }
   0x4   :  { %p143_p0 = scmp.ne.s32.totalorder %s15_s7, %s142_s8  ;;  %p148_p2 = scmp.lt.s32.totalorder %s142_s8, %s142_s8 }
   0x6   :  { %p149_p3 = por %p148_p2, %p147_p1 }
   0x8   :  { %p150_p4 = pnand %p149_p3, %p143_p0 }
   0xa   :  { %153 = shalt.err (!%p150_p4)
}
   0xb   :  { %17 = dma.hbm_to_vmem [thread:$0]  %s202_s0, 1024, %s15_s7, [#allocation3]  }
   0xc   :  { %174 = dma.done.wait [#allocation3], 1024  }
   0xd   :  { %175 = vsyncadd [#allocation3], 4294966272  ;;  %v21_v0 = vld [vmem:[#allocation2] sm:$0xff]  ;;  %v22_v1 = vld [vmem:[#allocation2 + $0x8] sm:$0xff]  ;;  %s179_s0 = smov [#allocation5]  }
   0xe   :  { %v23_v2 = vld [vmem:[#allocation2 + $0x10] sm:$0xff]  ;;  %v116_v3 = vadd.f32 -1.5, %v21_v0  ;;  %vm53_vm0 = vcmp.ne.f32.partialorder %v21_v0, %v21_v0  ;;  %v124_v4 = vclamps-f32 %v21_v0, 3.4028235e+38  ;;  %v117_v5 = vadd.f32 -1.5, %v22_v1  ;;  %v24_v6 = vld [vmem:[#allocation2 + $0x18] sm:$0xff] }
   0xf   :  { %v25_v7 = vld [vmem:[#allocation2 + $0x20] sm:$0xff]  ;;  %vm54_vm1 = vcmp.ne.f32.partialorder %v22_v1, %v22_v1  ;;  %v125_v8 = vclamps-f32 %v22_v1, 3.4028235e+38  ;;  %v118_v9 = vadd.f32 -1.5, %v23_v2  ;;  %vm55_vm2 = vcmp.ne.f32.partialorder %v23_v2, %v23_v2  ;;  %v26_v10 = vld [vmem:[#allocation2 + $0x28] sm:$0xff]  ;;  %v27_v11 = vld [vmem:[#allocation2 + $0x30] sm:$0xff] }
  0x10   :  { %v37_v12 = vand.u32 2147483647, %v116_v3  ;;  %v38_v13 = vand.u32 2147483647, %v117_v5  ;;  %v126_v14 = vclamps-f32 %v23_v2, 3.4028235e+38  ;;  %vm56_vm3 = vcmp.ne.f32.partialorder %v24_v6, %v24_v6 }
  0x11   :  { %v39_v15 = vand.u32 2147483647, %v118_v9  ;;  %v119_v16 = vadd.f32 -1.5, %v24_v6  ;;  %v127_v17 = vclamps-f32 %v24_v6, 3.4028235e+38  ;;  %v120_v18 = vadd.f32 -1.5, %v25_v7 }
  0x12   :  { %vm45_vm4 = vcmp.gt.f32.partialorder %v37_v12, 6.0  ;;  %vm46_vm5 = vcmp.gt.f32.partialorder %v38_v13, 6.0  ;;  %vm57_vm6 = vcmp.ne.f32.partialorder %v25_v7, %v25_v7  ;;  %v128_v19 = vclamps-f32 %v25_v7, 3.4028235e+38  ;;  %v28_v26 = vld [vmem:[#allocation2 + $0x38] sm:$0xff]  ;;  %s107_s11 = sshll.u32 %s179_s0, 4  ;;  %s108_s11 = int_to_ptr.vmem [resolvable:$true] %s107_s11 }
  0x13   :  { %vm61_vm7 = vmor %vm45_vm4, %vm53_vm0  ;;  %vm47_vm8 = vcmp.gt.f32.partialorder %v39_v15, 6.0  ;;  %v40_v20 = vand.u32 2147483647, %v119_v16  ;;  %v41_v21 = vand.u32 2147483647, %v120_v18  ;;  %v121_v22 = vadd.f32 -1.5, %v26_v10  ;;  %p159_p6 = scmp.lt.s32.totalorder %s108_s11, %s108_s11 }
  0x14   :  { %v85_v23 = vsel %vm61_vm7, 0.25, %v124_v4  ;;  %vm62_vm9 = vmor %vm46_vm5, %vm54_vm1  ;;  %vm58_vm10 = vcmp.ne.f32.partialorder %v26_v10, %v26_v10  ;;  %v129_v24 = vclamps-f32 %v26_v10, 3.4028235e+38  ;;  %v122_v25 = vadd.f32 -1.5, %v27_v11  ;;  %s154_s12 = scalar_lea.vmem %s108_s11, 1024 }
  0x15   :  { %93 = vst [vmem:[#allocation5] sm:$0xff] %v85_v23  ;;  %v86_v27 = vsel %vm62_vm9, 0.25, %v125_v8  ;;  %vm63_vm11 = vmor %vm47_vm8, %vm55_vm2  ;;  %vm48_vm12 = vcmp.gt.f32.partialorder %v40_v20, 6.0  ;;  %vm49_vm13 = vcmp.gt.f32.partialorder %v41_v21, 6.0  ;;  %v42_v28 = vand.u32 2147483647, %v121_v22  ;;  %p155_p5 = scmp.ne.s32.totalorder %s108_s11, %s154_s12  ;;  %p160_p7 = scmp.lt.s32.totalorder %s154_s12, %s154_s12 }
  0x16   :  { %94 = vst [vmem:[#allocation5 + $0x8] sm:$0xff] %v86_v27  ;;  %v87_v29 = vsel %vm63_vm11, 0.25, %v126_v14  ;;  %vm64_vm14 = vmor %vm48_vm12, %vm56_vm3  ;;  %v43_v30 = vand.u32 2147483647, %v122_v25  ;;  %vm59_vm15 = vcmp.ne.f32.partialorder %v27_v11, %v27_v11  ;;  %v130_v31 = vclamps-f32 %v27_v11, 3.4028235e+38 }
  0x17   :  { %95 = vst [vmem:[#allocation5 + $0x10] sm:$0xff] %v87_v29  ;;  %v88_v32 = vsel %vm64_vm14, 0.25, %v127_v17  ;;  %vm65_vm0 = vmor %vm49_vm13, %vm57_vm6  ;;  %vm50_vm1 = vcmp.gt.f32.partialorder %v42_v28, 6.0  ;;  %v123_v33 = vadd.f32 -1.5, %v28_v26  ;;  %vm60_vm7 = vcmp.ne.f32.partialorder %v28_v26, %v28_v26  ;;  %p161_p8 = por %p160_p7, %p159_p6 }
  0x18   :  { %96 = vst [vmem:[#allocation5 + $0x18] sm:$0xff] %v88_v32  ;;  %v89_v34 = vsel %vm65_vm0, 0.25, %v128_v19  ;;  %vm66_vm2 = vmor %vm50_vm1, %vm58_vm10  ;;  %vm51_vm4 = vcmp.gt.f32.partialorder %v43_v30, 6.0  ;;  %v131_v37 = vclamps-f32 %v28_v26, 3.4028235e+38 }
  0x19   :  { %97 = vst [vmem:[#allocation5 + $0x20] sm:$0xff] %v89_v34  ;;  %v90_v35 = vsel %vm66_vm2, 0.25, %v129_v24  ;;  %vm67_vm5 = vmor %vm51_vm4, %vm59_vm15  ;;  %v44_v36 = vand.u32 2147483647, %v123_v33  ;;  %p162_p9 = pnand %p161_p8, %p155_p5 }
  0x1a   :  { %98 = vst [vmem:[#allocation5 + $0x28] sm:$0xff] %v90_v35  ;;  %v91_v38 = vsel %vm67_vm5, 0.25, %v130_v31 }
  0x1b   :  { %99 = vst [vmem:[#allocation5 + $0x30] sm:$0xff] %v91_v38  ;;  %vm52_vm3 = vcmp.gt.f32.partialorder %v44_v36, 6.0 }
  0x1c   :  { %vm68_vm6 = vmor %vm52_vm3, %vm60_vm7 }
  0x1d   :  { %v92_v39 = vsel %vm68_vm6, 0.25, %v131_v37 }
  0x1e   :  { %100 = vst [vmem:[#allocation5 + $0x38] sm:$0xff] %v92_v39 }
  0x1f   :  { %165 = shalt.err (!%p162_p9)
}
  0x20   :  { %110 = dma.vmem_to_hbm [thread:$0]  %s108_s11, 1024, %s203_s1, [#allocation4]  }
  0x21   :  { %176 = dma.done.wait [#allocation4], 1024  }
  0x22   :  { %177 = vsyncadd [#allocation4], 4294966272 }
  0x23   :  { %114 = vsyncpa [#allocation3], 1 }
  0x24   :  { %115 = vsyncpa [#allocation4], 1 }

</bundles_post_ra>
